<compile_context>
chip_gen: v7x
topology: tpu7x:2x2x1
jax: 0.10.0
libtpu: 0.0.40
codegen_flags: <defaults>
</compile_context>

<pallas_src>
import functools
from math import pi

import numpy as np
import jax
import jax.numpy as jnp
from jax.experimental import pallas as pl
from jax.experimental.pallas import tpu as pltpu


# ----------------------------------------------------------------------------
# Pallas kernel: one grid step = T_BLK RNN timesteps (sequential / "arbitrary").
# Per timestep: `capacity` EUNN rotation layers (elementwise complex multiplies +
# neighbour swap via lane rolls), final omega phase, ModReLU (identity), add the
# precomputed input projection. State lives in the constant-index output refs.
# ----------------------------------------------------------------------------
def eunn_kernel(inp_ref, vdr_ref, vdi_ref, vor_ref, voi_ref, omr_ref, omi_ref,
                out_ref, hre_ref, him_ref, *, capacity, t_blk):
    g = pl.program_id(0)

    @pl.when(g == 0)
    def _():
        hre_ref[...] = jnp.zeros_like(hre_ref)
        him_ref[...] = jnp.zeros_like(him_ref)

    Hp = hre_ref.shape[-1]
    lane = jax.lax.broadcasted_iota(jnp.int32, (1, Hp), 1)
    lane_par = lane % 2

    # Hoist rotation vectors / parity masks out of the timestep loop.
    vd = [(vdr_ref[i:i + 1, :], vdi_ref[i:i + 1, :]) for i in range(capacity)]
    vo = [(vor_ref[i:i + 1, :], voi_ref[i:i + 1, :]) for i in range(capacity)]
    sel = [lane_par == (i % 2) for i in range(capacity)]
    om_re = omr_ref[...]
    om_im = omi_ref[...]

    h_re = hre_ref[...]
    h_im = him_ref[...]

    for tt in range(t_blk):
        for i in range(capacity):
            vd_re, vd_im = vd[i]
            vo_re, vo_im = vo[i]
            # Pairwise neighbour swap of the pre-diagonal state h via lane rolls
            # (XLU) instead of an (H,H) matmul. For layer parity p, lane j takes
            # h[j+1] when (j % 2 == p) else h[j-1]. Boundary / wrapped lanes are
            # harmless because vo_re/vo_im are zero there.
            left_re = pltpu.roll(h_re, Hp - 1, axis=1)   # lane j <- h[j+1]
            left_im = pltpu.roll(h_im, Hp - 1, axis=1)
            right_re = pltpu.roll(h_re, 1, axis=1)       # lane j <- h[j-1]
            right_im = pltpu.roll(h_im, 1, axis=1)
            p_re = jnp.where(sel[i], left_re, right_re)
            p_im = jnp.where(sel[i], left_im, right_im)
            # Fused layer update: cm(h, v_diag) + cm(permute(h), v_off_diag)
            n_re = h_re * vd_re - h_im * vd_im + p_re * vo_re - p_im * vo_im
            n_im = h_re * vd_im + h_im * vd_re + p_re * vo_im + p_im * vo_re
            h_re, h_im = n_re, n_im

        # Final diagonal phase: cm(h, [cos(omega), sin(omega)])
        u_re = h_re * om_re - h_im * om_im
        u_im = h_re * om_im + h_im * om_re

        # z = input_projection + hidden_layer(state); input has zero imaginary part.
        # ModReLU: norm = sqrt(|z|^2) + 1e-5 > 0 => relu(norm) == norm and
        # norm * (z / norm) == z, so ModReLU(z) == z exactly (matches torch math).
        h_re = inp_ref[tt] + u_re
        h_im = u_im
        out_ref[tt] = h_re            # output_type == 'real'

    hre_ref[...] = h_re
    him_ref[...] = h_im


# ----------------------------------------------------------------------------
# Parameter construction (replicates EUNNLayer.__init__ / _rotation_vectors,
# including the original code's sin_phi/cos_phi argument swap inside _v_diag
# and _v_off_diag). Vectors are padded on the lane axis to Hp (multiple of 128);
# padded off-diagonal entries and W columns are zero so padded lanes stay zero.
# ----------------------------------------------------------------------------
def _interleave(a, b):
    return jnp.stack([a, b], axis=1).reshape(-1)


def _rotation_vectors(i, H, theta, phi):
    ct, st = jnp.cos(theta), jnp.sin(theta)
    cp, sp = jnp.cos(phi), jnp.sin(phi)
    zeros = jnp.zeros_like(ct)
    one = jnp.ones((1,), jnp.float32)
    zero = jnp.zeros((1,), jnp.float32)

    # NOTE: the torch code calls _v_diag(i, cos_theta, cos_phi, sin_phi) against the
    # signature (i, cos_theta, sin_phi, cos_phi) -> phi terms are swapped. Replicated.
    vd_re = _interleave(sp * ct, ct)
    vd_im = _interleave(cp * ct, zeros)
    vo_re = _interleave(-sp * st, st)
    vo_im = _interleave(-cp * st, zeros)

    even = (i % 2 == 0)
    if not even:
        vd_re = jnp.concatenate([one, vd_re])
        vd_im = jnp.concatenate([zero, vd_im])
        vo_re = jnp.concatenate([zero, vo_re])
        vo_im = jnp.concatenate([zero, vo_im])
        if H % 2 == 0:
            vd_re = jnp.concatenate([vd_re, one])
            vd_im = jnp.concatenate([vd_im, zero])
            vo_re = jnp.concatenate([vo_re, zero])
            vo_im = jnp.concatenate([vo_im, zero])
    elif H % 2:
        vd_re = jnp.concatenate([vd_re, one])
        vd_im = jnp.concatenate([vd_im, zero])
        vo_re = jnp.concatenate([vo_re, zero])
        vo_im = jnp.concatenate([vo_im, zero])
    return vd_re, vd_im, vo_re, vo_im


def _perm_indices(parity, H):
    even_h = H // 2
    odd_h = (H - 1) // 2
    if H % 2 == 0:
        if parity == 0:
            idx = np.arange(2 * even_h).reshape(-1, 2)[:, ::-1].reshape(-1)
        else:
            idx = np.concatenate(
                [[0],
                 np.arange(1, 2 * odd_h + 1).reshape(-1, 2)[:, ::-1].reshape(-1),
                 [2 * odd_h + 1]])
    else:
        if parity == 0:
            idx = np.concatenate(
                [np.arange(2 * even_h).reshape(-1, 2)[:, ::-1].reshape(-1),
                 [2 * even_h]])
        else:
            idx = np.concatenate(
                [[0],
                 np.arange(1, 2 * odd_h + 1).reshape(-1, 2)[:, ::-1].reshape(-1)])
    return idx.astype(np.int32)


def init_eunn_params(key, input_size, hidden_size, capacity, *, hidden_pad=None):
    H = hidden_size
    Hp = hidden_pad or max(128, ((H + 127) // 128) * 128)
    even_h = H // 2
    odd_h = (H - 1) // 2
    even_c = (capacity + 1) // 2
    odd_c = capacity // 2

    ks = jax.random.split(key, 6)

    def unif(k, shape):
        return jax.random.uniform(k, shape, jnp.float32) * (2 * pi) - pi

    omega = unif(ks[0], (H,))
    even_theta = unif(ks[1], (even_c, even_h))
    odd_theta = unif(ks[2], (max(odd_c, 1), max(odd_h, 1)))
    even_phi = unif(ks[3], (even_c, even_h))
    odd_phi = unif(ks[4], (max(odd_c, 1), max(odd_h, 1)))
    # torch.nn.Linear weight is (out, in); y = x @ W.T  -> store W.T = (in, out)
    w = jax.random.uniform(ks[5], (hidden_size, input_size), jnp.float32,
                           -1.0 / np.sqrt(input_size), 1.0 / np.sqrt(input_size))
    w_t = jnp.transpose(w)  # (input_size, hidden_size)

    vd_re, vd_im, vo_re, vo_im, perm_idx = [], [], [], [], []
    for i in range(capacity):
        if i % 2:
            theta, phi = odd_theta[i // 2], odd_phi[i // 2]
        else:
            theta, phi = even_theta[i // 2], even_phi[i // 2]
        a, b, c, d = _rotation_vectors(i, H, theta, phi)
        vd_re.append(a); vd_im.append(b); vo_re.append(c); vo_im.append(d)
        perm_idx.append(_perm_indices(i % 2, H))

    def pad_rows(rows, fill):
        arr = jnp.stack(rows)                                   # (capacity, H)
        pad = jnp.full((arr.shape[0], Hp - H), fill, jnp.float32)
        return jnp.concatenate([arr, pad], axis=1)              # (capacity, Hp)

    om_re = jnp.concatenate([jnp.cos(omega), jnp.ones((Hp - H,), jnp.float32)])[None, :]
    om_im = jnp.concatenate([jnp.sin(omega), jnp.zeros((Hp - H,), jnp.float32)])[None, :]

    params = {
        "w": jnp.pad(w_t, ((0, 0), (0, Hp - H))),               # zero-padded columns
        "vd_re": pad_rows(vd_re, 1.0), "vd_im": pad_rows(vd_im, 0.0),
        "vo_re": pad_rows(vo_re, 0.0), "vo_im": pad_rows(vo_im, 0.0),  # zeros: required
        "om_re": om_re, "om_im": om_im,
    }
    return params, perm_idx


# ----------------------------------------------------------------------------
# Wrapper calling the Pallas kernel.
# ----------------------------------------------------------------------------
def eunn_forward(x, params, *, hidden_size, capacity, t_blk=None):
    seq, B, I = x.shape
    Hp = params["vd_re"].shape[1]
    Bp = max(8, ((B + 7) // 8) * 8)        # sublane-pad batch -> full-tile stores
    if t_blk is None:
        t_blk = seq
    assert seq % t_blk == 0, "seq_len must be a multiple of t_blk"

    # Hoisted input projection: one MXU-friendly matmul over the whole sequence,
    # removed from the serial recurrence path inside the kernel.
    inp_all = jnp.einsum("sbi,ih->sbh", x, params["w"],
                         precision=jax.lax.Precision.HIGHEST)   # (seq, B, Hp)
    if Bp != B:
        inp_all = jnp.pad(inp_all, ((0, 0), (0, Bp - B), (0, 0)))

    kernel = functools.partial(eunn_kernel, capacity=capacity, t_blk=t_blk)

    out, h_re, h_im = pl.pallas_call(
        kernel,
        out_shape=(
            jax.ShapeDtypeStruct((seq, Bp, Hp), jnp.float32),
            jax.ShapeDtypeStruct((Bp, Hp), jnp.float32),
            jax.ShapeDtypeStruct((Bp, Hp), jnp.float32),
        ),
        grid_spec=pltpu.PrefetchScalarGridSpec(
            num_scalar_prefetch=0,
            grid=(seq // t_blk,),
            in_specs=[
                pl.BlockSpec((t_blk, Bp, Hp), lambda t: (t, 0, 0)),
                pl.BlockSpec((capacity, Hp), lambda t: (0, 0)),
                pl.BlockSpec((capacity, Hp), lambda t: (0, 0)),
                pl.BlockSpec((capacity, Hp), lambda t: (0, 0)),
                pl.BlockSpec((capacity, Hp), lambda t: (0, 0)),
                pl.BlockSpec((1, Hp), lambda t: (0, 0)),
                pl.BlockSpec((1, Hp), lambda t: (0, 0)),
            ],
            out_specs=[
                pl.BlockSpec((t_blk, Bp, Hp), lambda t: (t, 0, 0)),
                # Constant index maps: these stay VMEM-resident across the grid
                # and act as the recurrent-state carry (no scratch needed).
                pl.BlockSpec((Bp, Hp), lambda t: (0, 0)),
                pl.BlockSpec((Bp, Hp), lambda t: (0, 0)),
            ],
        ),
        compiler_params=pltpu.CompilerParams(
            dimension_semantics=("arbitrary",)),
    )(inp_all, params["vd_re"], params["vd_im"],
      params["vo_re"], params["vo_im"], params["om_re"], params["om_im"])

    H = hidden_size
    state = jnp.stack([h_re[:B, :H], h_im[:B, :H]], axis=-1)   # (B, H, 2) like torch
    return out[:, :B, :H], state


# ----------------------------------------------------------------------------
# Pure-JAX reference (gather-based permutation, full ModReLU math) for validation.
# ----------------------------------------------------------------------------
def eunn_reference(x, params, perm_idx, *, capacity, hidden_size):
    seq, B, I = x.shape
    H = hidden_size
    w = params["w"][:, :H]
    inp = jnp.einsum("sbi,ih->sbh", x, w, precision=jax.lax.Precision.HIGHEST)
    h_re = jnp.zeros((B, H), jnp.float32)
    h_im = jnp.zeros((B, H), jnp.float32)
    outs = []
    for t in range(seq):
        a_re, a_im = h_re, h_im
        for i in range(capacity):
            vd_re = params["vd_re"][i, :H]; vd_im = params["vd_im"][i, :H]
            vo_re = params["vo_re"][i, :H]; vo_im = params["vo_im"][i, :H]
            d_re = a_re * vd_re - a_im * vd_im
            d_im = a_re * vd_im + a_im * vd_re
            idx = perm_idx[i]
            p_re, p_im = a_re[:, idx], a_im[:, idx]
            o_re = p_re * vo_re - p_im * vo_im
            o_im = p_re * vo_im + p_im * vo_re
            a_re, a_im = d_re + o_re, d_im + o_im
        om_re = params["om_re"][0, :H]; om_im = params["om_im"][0, :H]
        u_re = a_re * om_re - a_im * om_im
        u_im = a_re * om_im + a_im * om_re
        z_re, z_im = inp[t] + u_re, u_im
        norm = jnp.sqrt(z_re ** 2 + z_im ** 2) + 1e-5
        act = jnp.maximum(norm, 0.0)
        h_re, h_im = act * (z_re / norm), act * (z_im / norm)
        outs.append(h_re)
    return jnp.stack(outs, 0), jnp.stack([h_re, h_im], -1)


if __name__ == "__main__":
    SEQ, BATCH, INPUT, HIDDEN, CAPACITY = 8, 2, 16, 32, 2
    T_BLK = 4   # timesteps per grid step (amortizes per-step overhead)

    key = jax.random.PRNGKey(0)
    k_param, k_x = jax.random.split(key)
    params, perm_idx = init_eunn_params(k_param, INPUT, HIDDEN, CAPACITY)

    x = jax.random.normal(k_x, (SEQ, BATCH, INPUT), jnp.float32)

    out, state = eunn_forward(x, params, hidden_size=HIDDEN, capacity=CAPACITY,
                              t_blk=T_BLK)
    out = jax.block_until_ready(out)
    state = jax.block_until_ready(state)

    ref_out, ref_state = eunn_reference(x, params, perm_idx, capacity=CAPACITY,
                                        hidden_size=HIDDEN)

    assert out.shape == (SEQ, BATCH, HIDDEN)
    assert state.shape == (BATCH, HIDDEN, 2)
    np.testing.assert_allclose(np.asarray(out), np.asarray(ref_out),
                               rtol=1e-2, atol=1e-2)
    np.testing.assert_allclose(np.asarray(state), np.asarray(ref_state),
                               rtol=1e-2, atol=1e-2)
    print("KERNEL_OK")
</pallas_src>

<mosaic_0001>
module attributes {stable_mosaic.version = 11 : i64} {
  func.func @eunn_kernel(%arg0: i32, %arg1: memref<4x8x128xf32, #tpu.memory_space<vmem>>, %arg2: memref<2x128xf32, #tpu.memory_space<vmem>>, %arg3: memref<2x128xf32, #tpu.memory_space<vmem>>, %arg4: memref<2x128xf32, #tpu.memory_space<vmem>>, %arg5: memref<2x128xf32, #tpu.memory_space<vmem>>, %arg6: memref<1x128xf32, #tpu.memory_space<vmem>>, %arg7: memref<1x128xf32, #tpu.memory_space<vmem>>, %arg8: memref<4x8x128xf32, #tpu.memory_space<vmem>>, %arg9: memref<8x128xf32, #tpu.memory_space<vmem>>, %arg10: memref<8x128xf32, #tpu.memory_space<vmem>>) attributes {dimension_semantics = [#tpu.dimension_semantics<arbitrary>], iteration_bounds = array<i64: 2>, scalar_prefetch = 0 : i64, scratch_operands = 0 : i64, tpu.core_type = #tpu.core_type<tc>, window_params = [{transform_indices = @transform_0, window_bounds = array<i64: 4, 8, 128>}, {pipeline_mode = #tpu.pipeline_mode<synchronous>, transform_indices = @transform_1, window_bounds = array<i64: 2, 128>}, {pipeline_mode = #tpu.pipeline_mode<synchronous>, transform_indices = @transform_2, window_bounds = array<i64: 2, 128>}, {pipeline_mode = #tpu.pipeline_mode<synchronous>, transform_indices = @transform_3, window_bounds = array<i64: 2, 128>}, {pipeline_mode = #tpu.pipeline_mode<synchronous>, transform_indices = @transform_4, window_bounds = array<i64: 2, 128>}, {pipeline_mode = #tpu.pipeline_mode<synchronous>, transform_indices = @transform_5, window_bounds = array<i64: 1, 128>}, {pipeline_mode = #tpu.pipeline_mode<synchronous>, transform_indices = @transform_6, window_bounds = array<i64: 1, 128>}, {transform_indices = @transform_7, window_bounds = array<i64: 4, 8, 128>}, {pipeline_mode = #tpu.pipeline_mode<synchronous>, transform_indices = @transform_8, window_bounds = array<i64: 8, 128>}, {pipeline_mode = #tpu.pipeline_mode<synchronous>, transform_indices = @transform_9, window_bounds = array<i64: 8, 128>}]} {
    %c0_i32 = arith.constant 0 : i32
    %0 = arith.cmpi eq, %arg0, %c0_i32 : i32
    %1 = arith.extui %0 : i1 to i32
    %c0_i32_0 = arith.constant 0 : i32
    %2 = arith.cmpi ne, %1, %c0_i32_0 : i32
    scf.if %2 {
      %cst = arith.constant 0.000000e+00 : f32
      %358 = vector.broadcast %cst : f32 to vector<8x128xf32>
      %c0_86 = arith.constant 0 : index
      %c0_87 = arith.constant 0 : index
      %359 = vector.load %arg9[%c0_86, %c0_87] : memref<8x128xf32, #tpu.memory_space<vmem>>, vector<8x128xf32>
      tpu.vector_store %arg9[%c0_86, %c0_87], %358 {strides = array<i32>} : memref<8x128xf32, #tpu.memory_space<vmem>>, vector<8x128xf32>,
      %cst_88 = arith.constant 0.000000e+00 : f32
      %360 = vector.broadcast %cst_88 : f32 to vector<8x128xf32>
      %c0_89 = arith.constant 0 : index
      %c0_90 = arith.constant 0 : index
      %361 = vector.load %arg10[%c0_89, %c0_90] : memref<8x128xf32, #tpu.memory_space<vmem>>, vector<8x128xf32>
      tpu.vector_store %arg10[%c0_89, %c0_90], %360 {strides = array<i32>} : memref<8x128xf32, #tpu.memory_space<vmem>>, vector<8x128xf32>,
    } else {
    }
    %3 = tpu.iota {dimensions = array<i32: 1>} : vector<1x128xi32>
    %c2_i32 = arith.constant 2 : i32
    %c0_i32_1 = arith.constant 0 : i32
    %4 = arith.cmpi eq, %c2_i32, %c0_i32_1 : i32
    %c1_i32 = arith.constant 1 : i32
    %5 = arith.select %4, %c1_i32, %c2_i32 : i32
    %6 = vector.broadcast %5 : i32 to vector<1x128xi32>
    %7 = arith.remsi %3, %6 : vector<1x128xi32>
    %c0_i32_2 = arith.constant 0 : i32
    %8 = vector.broadcast %c0_i32_2 : i32 to vector<1x128xi32>
    %9 = arith.cmpi ne, %7, %8 : vector<1x128xi32>
    %c0_i32_3 = arith.constant 0 : i32
    %10 = vector.broadcast %c0_i32_3 : i32 to vector<1x128xi32>
    %11 = arith.cmpi slt, %7, %10 : vector<1x128xi32>
    %c0_i32_4 = arith.constant 0 : i32
    %12 = arith.cmpi slt, %5, %c0_i32_4 : i32
    %13 = vector.broadcast %12 : i1 to vector<1x128xi1>
    %14 = vector.broadcast %13 : vector<1x128xi1> to vector<1x128xi1>
    %15 = arith.xori %11, %14 : vector<1x128xi1>
    %16 = arith.andi %15, %9 : vector<1x128xi1>
    %17 = vector.broadcast %5 : i32 to vector<1x128xi32>
    %18 = arith.addi %7, %17 : vector<1x128xi32>
    %19 = arith.select %16, %18, %7 : vector<1x128xi1>, vector<1x128xi32>
    %c0 = arith.constant 0 : index
    %c0_5 = arith.constant 0 : index
    %20 = vector.load %arg2[%c0, %c0_5] : memref<2x128xf32, #tpu.memory_space<vmem>>, vector<1x128xf32>
    %c0_6 = arith.constant 0 : index
    %c0_7 = arith.constant 0 : index
    %21 = vector.load %arg3[%c0_6, %c0_7] : memref<2x128xf32, #tpu.memory_space<vmem>>, vector<1x128xf32>
    %c1 = arith.constant 1 : index
    %c0_8 = arith.constant 0 : index
    %22 = vector.load %arg2[%c1, %c0_8] : memref<2x128xf32, #tpu.memory_space<vmem>>, vector<1x128xf32>
    %c1_9 = arith.constant 1 : index
    %c0_10 = arith.constant 0 : index
    %23 = vector.load %arg3[%c1_9, %c0_10] : memref<2x128xf32, #tpu.memory_space<vmem>>, vector<1x128xf32>
    %c0_11 = arith.constant 0 : index
    %c0_12 = arith.constant 0 : index
    %24 = vector.load %arg4[%c0_11, %c0_12] : memref<2x128xf32, #tpu.memory_space<vmem>>, vector<1x128xf32>
    %c0_13 = arith.constant 0 : index
    %c0_14 = arith.constant 0 : index
    %25 = vector.load %arg5[%c0_13, %c0_14] : memref<2x128xf32, #tpu.memory_space<vmem>>, vector<1x128xf32>
    %c1_15 = arith.constant 1 : index
    %c0_16 = arith.constant 0 : index
    %26 = vector.load %arg4[%c1_15, %c0_16] : memref<2x128xf32, #tpu.memory_space<vmem>>, vector<1x128xf32>
    %c1_17 = arith.constant 1 : index
    %c0_18 = arith.constant 0 : index
    %27 = vector.load %arg5[%c1_17, %c0_18] : memref<2x128xf32, #tpu.memory_space<vmem>>, vector<1x128xf32>
    %c0_i32_19 = arith.constant 0 : i32
    %28 = vector.broadcast %c0_i32_19 : i32 to vector<1x128xi32>
    %29 = arith.cmpi eq, %19, %28 : vector<1x128xi32>
    %c1_i32_20 = arith.constant 1 : i32
    %30 = vector.broadcast %c1_i32_20 : i32 to vector<1x128xi32>
    %31 = arith.cmpi eq, %19, %30 : vector<1x128xi32>
    %c0_21 = arith.constant 0 : index
    %c0_22 = arith.constant 0 : index
    %32 = vector.load %arg6[%c0_21, %c0_22] : memref<1x128xf32, #tpu.memory_space<vmem>>, vector<1x128xf32>
    %c0_23 = arith.constant 0 : index
    %c0_24 = arith.constant 0 : index
    %33 = vector.load %arg7[%c0_23, %c0_24] : memref<1x128xf32, #tpu.memory_space<vmem>>, vector<1x128xf32>
    %c0_25 = arith.constant 0 : index
    %c0_26 = arith.constant 0 : index
    %34 = vector.load %arg9[%c0_25, %c0_26] : memref<8x128xf32, #tpu.memory_space<vmem>>, vector<8x128xf32>
    %c0_27 = arith.constant 0 : index
    %c0_28 = arith.constant 0 : index
    %35 = vector.load %arg10[%c0_27, %c0_28] : memref<8x128xf32, #tpu.memory_space<vmem>>, vector<8x128xf32>
    %c127_i32 = arith.constant 127 : i32
    %36 = tpu.dynamic_rotate %34 by %c127_i32 dim 1 : vector<8x128xf32>, i32 -> vector<8x128xf32>
    %c127_i32_29 = arith.constant 127 : i32
    %37 = tpu.dynamic_rotate %35 by %c127_i32_29 dim 1 : vector<8x128xf32>, i32 -> vector<8x128xf32>
    %c1_i32_30 = arith.constant 1 : i32
    %38 = tpu.dynamic_rotate %34 by %c1_i32_30 dim 1 : vector<8x128xf32>, i32 -> vector<8x128xf32>
    %c1_i32_31 = arith.constant 1 : i32
    %39 = tpu.dynamic_rotate %35 by %c1_i32_31 dim 1 : vector<8x128xf32>, i32 -> vector<8x128xf32>
    %40 = vector.shape_cast %29 : vector<1x128xi1> to vector<1x128xi1>
    %41 = vector.broadcast %40 : vector<1x128xi1> to vector<8x128xi1>
    %42 = arith.select %41, %36, %38 : vector<8x128xi1>, vector<8x128xf32>
    %43 = vector.shape_cast %29 : vector<1x128xi1> to vector<1x128xi1>
    %44 = vector.broadcast %43 : vector<1x128xi1> to vector<8x128xi1>
    %45 = arith.select %44, %37, %39 : vector<8x128xi1>, vector<8x128xf32>
    %46 = vector.broadcast %20 : vector<1x128xf32> to vector<8x128xf32>
    %47 = arith.mulf %34, %46 : vector<8x128xf32>
    %48 = vector.broadcast %21 : vector<1x128xf32> to vector<8x128xf32>
    %49 = arith.mulf %35, %48 : vector<8x128xf32>
    %50 = arith.subf %47, %49 : vector<8x128xf32>
    %51 = vector.broadcast %24 : vector<1x128xf32> to vector<8x128xf32>
    %52 = arith.mulf %42, %51 : vector<8x128xf32>
    %53 = arith.addf %50, %52 : vector<8x128xf32>
    %54 = vector.broadcast %25 : vector<1x128xf32> to vector<8x128xf32>
    %55 = arith.mulf %45, %54 : vector<8x128xf32>
    %56 = arith.subf %53, %55 : vector<8x128xf32>
    %57 = vector.broadcast %21 : vector<1x128xf32> to vector<8x128xf32>
    %58 = arith.mulf %34, %57 : vector<8x128xf32>
    %59 = vector.broadcast %20 : vector<1x128xf32> to vector<8x128xf32>
    %60 = arith.mulf %35, %59 : vector<8x128xf32>
    %61 = arith.addf %58, %60 : vector<8x128xf32>
    %62 = vector.broadcast %25 : vector<1x128xf32> to vector<8x128xf32>
    %63 = arith.mulf %42, %62 : vector<8x128xf32>
    %64 = arith.addf %61, %63 : vector<8x128xf32>
    %65 = vector.broadcast %24 : vector<1x128xf32> to vector<8x128xf32>
    %66 = arith.mulf %45, %65 : vector<8x128xf32>
    %67 = arith.addf %64, %66 : vector<8x128xf32>
    %c127_i32_32 = arith.constant 127 : i32
    %68 = tpu.dynamic_rotate %56 by %c127_i32_32 dim 1 : vector<8x128xf32>, i32 -> vector<8x128xf32>
    %c127_i32_33 = arith.constant 127 : i32
    %69 = tpu.dynamic_rotate %67 by %c127_i32_33 dim 1 : vector<8x128xf32>, i32 -> vector<8x128xf32>
    %c1_i32_34 = arith.constant 1 : i32
    %70 = tpu.dynamic_rotate %56 by %c1_i32_34 dim 1 : vector<8x128xf32>, i32 -> vector<8x128xf32>
    %c1_i32_35 = arith.constant 1 : i32
    %71 = tpu.dynamic_rotate %67 by %c1_i32_35 dim 1 : vector<8x128xf32>, i32 -> vector<8x128xf32>
    %72 = vector.shape_cast %31 : vector<1x128xi1> to vector<1x128xi1>
    %73 = vector.broadcast %72 : vector<1x128xi1> to vector<8x128xi1>
    %74 = arith.select %73, %68, %70 : vector<8x128xi1>, vector<8x128xf32>
    %75 = vector.shape_cast %31 : vector<1x128xi1> to vector<1x128xi1>
    %76 = vector.broadcast %75 : vector<1x128xi1> to vector<8x128xi1>
    %77 = arith.select %76, %69, %71 : vector<8x128xi1>, vector<8x128xf32>
    %78 = vector.broadcast %22 : vector<1x128xf32> to vector<8x128xf32>
    %79 = arith.mulf %56, %78 : vector<8x128xf32>
    %80 = vector.broadcast %23 : vector<1x128xf32> to vector<8x128xf32>
    %81 = arith.mulf %67, %80 : vector<8x128xf32>
    %82 = arith.subf %79, %81 : vector<8x128xf32>
    %83 = vector.broadcast %26 : vector<1x128xf32> to vector<8x128xf32>
    %84 = arith.mulf %74, %83 : vector<8x128xf32>
    %85 = arith.addf %82, %84 : vector<8x128xf32>
    %86 = vector.broadcast %27 : vector<1x128xf32> to vector<8x128xf32>
    %87 = arith.mulf %77, %86 : vector<8x128xf32>
    %88 = arith.subf %85, %87 : vector<8x128xf32>
    %89 = vector.broadcast %23 : vector<1x128xf32> to vector<8x128xf32>
    %90 = arith.mulf %56, %89 : vector<8x128xf32>
    %91 = vector.broadcast %22 : vector<1x128xf32> to vector<8x128xf32>
    %92 = arith.mulf %67, %91 : vector<8x128xf32>
    %93 = arith.addf %90, %92 : vector<8x128xf32>
    %94 = vector.broadcast %27 : vector<1x128xf32> to vector<8x128xf32>
    %95 = arith.mulf %74, %94 : vector<8x128xf32>
    %96 = arith.addf %93, %95 : vector<8x128xf32>
    %97 = vector.broadcast %26 : vector<1x128xf32> to vector<8x128xf32>
    %98 = arith.mulf %77, %97 : vector<8x128xf32>
    %99 = arith.addf %96, %98 : vector<8x128xf32>
    %100 = vector.broadcast %32 : vector<1x128xf32> to vector<8x128xf32>
    %101 = arith.mulf %88, %100 : vector<8x128xf32>
    %102 = vector.broadcast %33 : vector<1x128xf32> to vector<8x128xf32>
    %103 = arith.mulf %99, %102 : vector<8x128xf32>
    %104 = arith.subf %101, %103 : vector<8x128xf32>
    %105 = vector.broadcast %33 : vector<1x128xf32> to vector<8x128xf32>
    %106 = arith.mulf %88, %105 : vector<8x128xf32>
    %107 = vector.broadcast %32 : vector<1x128xf32> to vector<8x128xf32>
    %108 = arith.mulf %99, %107 : vector<8x128xf32>
    %109 = arith.addf %106, %108 : vector<8x128xf32>
    %c0_36 = arith.constant 0 : index
    %c0_37 = arith.constant 0 : index
    %c0_38 = arith.constant 0 : index
    %110 = vector.load %arg1[%c0_36, %c0_37, %c0_38] : memref<4x8x128xf32, #tpu.memory_space<vmem>>, vector<1x8x128xf32>
    %111 = vector.shape_cast %110 : vector<1x8x128xf32> to vector<8x128xf32>
    %112 = arith.addf %111, %104 : vector<8x128xf32>
    %c0_39 = arith.constant 0 : index
    %c0_40 = arith.constant 0 : index
    %c0_41 = arith.constant 0 : index
    %113 = vector.load %arg8[%c0_39, %c0_40, %c0_41] : memref<4x8x128xf32, #tpu.memory_space<vmem>>, vector<1x8x128xf32>
    %114 = vector.shape_cast %113 : vector<1x8x128xf32> to vector<8x128xf32>
    %115 = vector.shape_cast %112 : vector<8x128xf32> to vector<1x8x128xf32>
    tpu.vector_store %arg8[%c0_39, %c0_40, %c0_41], %115 {strides = array<i32>} : memref<4x8x128xf32, #tpu.memory_space<vmem>>, vector<1x8x128xf32>,
    %c127_i32_42 = arith.constant 127 : i32
    %116 = tpu.dynamic_rotate %112 by %c127_i32_42 dim 1 : vector<8x128xf32>, i32 -> vector<8x128xf32>
    %c127_i32_43 = arith.constant 127 : i32
    %117 = tpu.dynamic_rotate %109 by %c127_i32_43 dim 1 : vector<8x128xf32>, i32 -> vector<8x128xf32>
    %c1_i32_44 = arith.constant 1 : i32
    %118 = tpu.dynamic_rotate %112 by %c1_i32_44 dim 1 : vector<8x128xf32>, i32 -> vector<8x128xf32>
    %c1_i32_45 = arith.constant 1 : i32
    %119 = tpu.dynamic_rotate %109 by %c1_i32_45 dim 1 : vector<8x128xf32>, i32 -> vector<8x128xf32>
    %120 = vector.shape_cast %29 : vector<1x128xi1> to vector<1x128xi1>
    %121 = vector.broadcast %120 : vector<1x128xi1> to vector<8x128xi1>
    %122 = arith.select %121, %116, %118 : vector<8x128xi1>, vector<8x128xf32>
    %123 = vector.shape_cast %29 : vector<1x128xi1> to vector<1x128xi1>
    %124 = vector.broadcast %123 : vector<1x128xi1> to vector<8x128xi1>
    %125 = arith.select %124, %117, %119 : vector<8x128xi1>, vector<8x128xf32>
    %126 = vector.broadcast %20 : vector<1x128xf32> to vector<8x128xf32>
    %127 = arith.mulf %112, %126 : vector<8x128xf32>
    %128 = vector.broadcast %21 : vector<1x128xf32> to vector<8x128xf32>
    %129 = arith.mulf %109, %128 : vector<8x128xf32>
    %130 = arith.subf %127, %129 : vector<8x128xf32>
    %131 = vector.broadcast %24 : vector<1x128xf32> to vector<8x128xf32>
    %132 = arith.mulf %122, %131 : vector<8x128xf32>
    %133 = arith.addf %130, %132 : vector<8x128xf32>
    %134 = vector.broadcast %25 : vector<1x128xf32> to vector<8x128xf32>
    %135 = arith.mulf %125, %134 : vector<8x128xf32>
    %136 = arith.subf %133, %135 : vector<8x128xf32>
    %137 = vector.broadcast %21 : vector<1x128xf32> to vector<8x128xf32>
    %138 = arith.mulf %112, %137 : vector<8x128xf32>
    %139 = vector.broadcast %20 : vector<1x128xf32> to vector<8x128xf32>
    %140 = arith.mulf %109, %139 : vector<8x128xf32>
    %141 = arith.addf %138, %140 : vector<8x128xf32>
    %142 = vector.broadcast %25 : vector<1x128xf32> to vector<8x128xf32>
    %143 = arith.mulf %122, %142 : vector<8x128xf32>
    %144 = arith.addf %141, %143 : vector<8x128xf32>
    %145 = vector.broadcast %24 : vector<1x128xf32> to vector<8x128xf32>
    %146 = arith.mulf %125, %145 : vector<8x128xf32>
    %147 = arith.addf %144, %146 : vector<8x128xf32>
    %c127_i32_46 = arith.constant 127 : i32
    %148 = tpu.dynamic_rotate %136 by %c127_i32_46 dim 1 : vector<8x128xf32>, i32 -> vector<8x128xf32>
    %c127_i32_47 = arith.constant 127 : i32
    %149 = tpu.dynamic_rotate %147 by %c127_i32_47 dim 1 : vector<8x128xf32>, i32 -> vector<8x128xf32>
    %c1_i32_48 = arith.constant 1 : i32
    %150 = tpu.dynamic_rotate %136 by %c1_i32_48 dim 1 : vector<8x128xf32>, i32 -> vector<8x128xf32>
    %c1_i32_49 = arith.constant 1 : i32
    %151 = tpu.dynamic_rotate %147 by %c1_i32_49 dim 1 : vector<8x128xf32>, i32 -> vector<8x128xf32>
    %152 = vector.shape_cast %31 : vector<1x128xi1> to vector<1x128xi1>
    %153 = vector.broadcast %152 : vector<1x128xi1> to vector<8x128xi1>
    %154 = arith.select %153, %148, %150 : vector<8x128xi1>, vector<8x128xf32>
    %155 = vector.shape_cast %31 : vector<1x128xi1> to vector<1x128xi1>
    %156 = vector.broadcast %155 : vector<1x128xi1> to vector<8x128xi1>
    %157 = arith.select %156, %149, %151 : vector<8x128xi1>, vector<8x128xf32>
    %158 = vector.broadcast %22 : vector<1x128xf32> to vector<8x128xf32>
    %159 = arith.mulf %136, %158 : vector<8x128xf32>
    %160 = vector.broadcast %23 : vector<1x128xf32> to vector<8x128xf32>
    %161 = arith.mulf %147, %160 : vector<8x128xf32>
    %162 = arith.subf %159, %161 : vector<8x128xf32>
    %163 = vector.broadcast %26 : vector<1x128xf32> to vector<8x128xf32>
    %164 = arith.mulf %154, %163 : vector<8x128xf32>
    %165 = arith.addf %162, %164 : vector<8x128xf32>
    %166 = vector.broadcast %27 : vector<1x128xf32> to vector<8x128xf32>
    %167 = arith.mulf %157, %166 : vector<8x128xf32>
    %168 = arith.subf %165, %167 : vector<8x128xf32>
    %169 = vector.broadcast %23 : vector<1x128xf32> to vector<8x128xf32>
    %170 = arith.mulf %136, %169 : vector<8x128xf32>
    %171 = vector.broadcast %22 : vector<1x128xf32> to vector<8x128xf32>
    %172 = arith.mulf %147, %171 : vector<8x128xf32>
    %173 = arith.addf %170, %172 : vector<8x128xf32>
    %174 = vector.broadcast %27 : vector<1x128xf32> to vector<8x128xf32>
    %175 = arith.mulf %154, %174 : vector<8x128xf32>
    %176 = arith.addf %173, %175 : vector<8x128xf32>
    %177 = vector.broadcast %26 : vector<1x128xf32> to vector<8x128xf32>
    %178 = arith.mulf %157, %177 : vector<8x128xf32>
    %179 = arith.addf %176, %178 : vector<8x128xf32>
    %180 = vector.broadcast %32 : vector<1x128xf32> to vector<8x128xf32>
    %181 = arith.mulf %168, %180 : vector<8x128xf32>
    %182 = vector.broadcast %33 : vector<1x128xf32> to vector<8x128xf32>
    %183 = arith.mulf %179, %182 : vector<8x128xf32>
    %184 = arith.subf %181, %183 : vector<8x128xf32>
    %185 = vector.broadcast %33 : vector<1x128xf32> to vector<8x128xf32>
    %186 = arith.mulf %168, %185 : vector<8x128xf32>
    %187 = vector.broadcast %32 : vector<1x128xf32> to vector<8x128xf32>
    %188 = arith.mulf %179, %187 : vector<8x128xf32>
    %189 = arith.addf %186, %188 : vector<8x128xf32>
    %c1_50 = arith.constant 1 : index
    %c0_51 = arith.constant 0 : index
    %c0_52 = arith.constant 0 : index
    %190 = vector.load %arg1[%c1_50, %c0_51, %c0_52] : memref<4x8x128xf32, #tpu.memory_space<vmem>>, vector<1x8x128xf32>
    %191 = vector.shape_cast %190 : vector<1x8x128xf32> to vector<8x128xf32>
    %192 = arith.addf %191, %184 : vector<8x128xf32>
    %c1_53 = arith.constant 1 : index
    %c0_54 = arith.constant 0 : index
    %c0_55 = arith.constant 0 : index
    %193 = vector.load %arg8[%c1_53, %c0_54, %c0_55] : memref<4x8x128xf32, #tpu.memory_space<vmem>>, vector<1x8x128xf32>
    %194 = vector.shape_cast %193 : vector<1x8x128xf32> to vector<8x128xf32>
    %195 = vector.shape_cast %192 : vector<8x128xf32> to vector<1x8x128xf32>
    tpu.vector_store %arg8[%c1_53, %c0_54, %c0_55], %195 {strides = array<i32>} : memref<4x8x128xf32, #tpu.memory_space<vmem>>, vector<1x8x128xf32>,
    %c127_i32_56 = arith.constant 127 : i32
    %196 = tpu.dynamic_rotate %192 by %c127_i32_56 dim 1 : vector<8x128xf32>, i32 -> vector<8x128xf32>
    %c127_i32_57 = arith.constant 127 : i32
    %197 = tpu.dynamic_rotate %189 by %c127_i32_57 dim 1 : vector<8x128xf32>, i32 -> vector<8x128xf32>
    %c1_i32_58 = arith.constant 1 : i32
    %198 = tpu.dynamic_rotate %192 by %c1_i32_58 dim 1 : vector<8x128xf32>, i32 -> vector<8x128xf32>
    %c1_i32_59 = arith.constant 1 : i32
    %199 = tpu.dynamic_rotate %189 by %c1_i32_59 dim 1 : vector<8x128xf32>, i32 -> vector<8x128xf32>
    %200 = vector.shape_cast %29 : vector<1x128xi1> to vector<1x128xi1>
    %201 = vector.broadcast %200 : vector<1x128xi1> to vector<8x128xi1>
    %202 = arith.select %201, %196, %198 : vector<8x128xi1>, vector<8x128xf32>
    %203 = vector.shape_cast %29 : vector<1x128xi1> to vector<1x128xi1>
    %204 = vector.broadcast %203 : vector<1x128xi1> to vector<8x128xi1>
    %205 = arith.select %204, %197, %199 : vector<8x128xi1>, vector<8x128xf32>
    %206 = vector.broadcast %20 : vector<1x128xf32> to vector<8x128xf32>
    %207 = arith.mulf %192, %206 : vector<8x128xf32>
    %208 = vector.broadcast %21 : vector<1x128xf32> to vector<8x128xf32>
    %209 = arith.mulf %189, %208 : vector<8x128xf32>
    %210 = arith.subf %207, %209 : vector<8x128xf32>
    %211 = vector.broadcast %24 : vector<1x128xf32> to vector<8x128xf32>
    %212 = arith.mulf %202, %211 : vector<8x128xf32>
    %213 = arith.addf %210, %212 : vector<8x128xf32>
    %214 = vector.broadcast %25 : vector<1x128xf32> to vector<8x128xf32>
    %215 = arith.mulf %205, %214 : vector<8x128xf32>
    %216 = arith.subf %213, %215 : vector<8x128xf32>
    %217 = vector.broadcast %21 : vector<1x128xf32> to vector<8x128xf32>
    %218 = arith.mulf %192, %217 : vector<8x128xf32>
    %219 = vector.broadcast %20 : vector<1x128xf32> to vector<8x128xf32>
    %220 = arith.mulf %189, %219 : vector<8x128xf32>
    %221 = arith.addf %218, %220 : vector<8x128xf32>
    %222 = vector.broadcast %25 : vector<1x128xf32> to vector<8x128xf32>
    %223 = arith.mulf %202, %222 : vector<8x128xf32>
    %224 = arith.addf %221, %223 : vector<8x128xf32>
    %225 = vector.broadcast %24 : vector<1x128xf32> to vector<8x128xf32>
    %226 = arith.mulf %205, %225 : vector<8x128xf32>
    %227 = arith.addf %224, %226 : vector<8x128xf32>
    %c127_i32_60 = arith.constant 127 : i32
    %228 = tpu.dynamic_rotate %216 by %c127_i32_60 dim 1 : vector<8x128xf32>, i32 -> vector<8x128xf32>
    %c127_i32_61 = arith.constant 127 : i32
    %229 = tpu.dynamic_rotate %227 by %c127_i32_61 dim 1 : vector<8x128xf32>, i32 -> vector<8x128xf32>
    %c1_i32_62 = arith.constant 1 : i32
    %230 = tpu.dynamic_rotate %216 by %c1_i32_62 dim 1 : vector<8x128xf32>, i32 -> vector<8x128xf32>
    %c1_i32_63 = arith.constant 1 : i32
    %231 = tpu.dynamic_rotate %227 by %c1_i32_63 dim 1 : vector<8x128xf32>, i32 -> vector<8x128xf32>
    %232 = vector.shape_cast %31 : vector<1x128xi1> to vector<1x128xi1>
    %233 = vector.broadcast %232 : vector<1x128xi1> to vector<8x128xi1>
    %234 = arith.select %233, %228, %230 : vector<8x128xi1>, vector<8x128xf32>
    %235 = vector.shape_cast %31 : vector<1x128xi1> to vector<1x128xi1>
    %236 = vector.broadcast %235 : vector<1x128xi1> to vector<8x128xi1>
    %237 = arith.select %236, %229, %231 : vector<8x128xi1>, vector<8x128xf32>
    %238 = vector.broadcast %22 : vector<1x128xf32> to vector<8x128xf32>
    %239 = arith.mulf %216, %238 : vector<8x128xf32>
    %240 = vector.broadcast %23 : vector<1x128xf32> to vector<8x128xf32>
    %241 = arith.mulf %227, %240 : vector<8x128xf32>
    %242 = arith.subf %239, %241 : vector<8x128xf32>
    %243 = vector.broadcast %26 : vector<1x128xf32> to vector<8x128xf32>
    %244 = arith.mulf %234, %243 : vector<8x128xf32>
    %245 = arith.addf %242, %244 : vector<8x128xf32>
    %246 = vector.broadcast %27 : vector<1x128xf32> to vector<8x128xf32>
    %247 = arith.mulf %237, %246 : vector<8x128xf32>
    %248 = arith.subf %245, %247 : vector<8x128xf32>
    %249 = vector.broadcast %23 : vector<1x128xf32> to vector<8x128xf32>
    %250 = arith.mulf %216, %249 : vector<8x128xf32>
    %251 = vector.broadcast %22 : vector<1x128xf32> to vector<8x128xf32>
    %252 = arith.mulf %227, %251 : vector<8x128xf32>
    %253 = arith.addf %250, %252 : vector<8x128xf32>
    %254 = vector.broadcast %27 : vector<1x128xf32> to vector<8x128xf32>
    %255 = arith.mulf %234, %254 : vector<8x128xf32>
    %256 = arith.addf %253, %255 : vector<8x128xf32>
    %257 = vector.broadcast %26 : vector<1x128xf32> to vector<8x128xf32>
    %258 = arith.mulf %237, %257 : vector<8x128xf32>
    %259 = arith.addf %256, %258 : vector<8x128xf32>
    %260 = vector.broadcast %32 : vector<1x128xf32> to vector<8x128xf32>
    %261 = arith.mulf %248, %260 : vector<8x128xf32>
    %262 = vector.broadcast %33 : vector<1x128xf32> to vector<8x128xf32>
    %263 = arith.mulf %259, %262 : vector<8x128xf32>
    %264 = arith.subf %261, %263 : vector<8x128xf32>
    %265 = vector.broadcast %33 : vector<1x128xf32> to vector<8x128xf32>
    %266 = arith.mulf %248, %265 : vector<8x128xf32>
    %267 = vector.broadcast %32 : vector<1x128xf32> to vector<8x128xf32>
    %268 = arith.mulf %259, %267 : vector<8x128xf32>
    %269 = arith.addf %266, %268 : vector<8x128xf32>
    %c2 = arith.constant 2 : index
    %c0_64 = arith.constant 0 : index
    %c0_65 = arith.constant 0 : index
    %270 = vector.load %arg1[%c2, %c0_64, %c0_65] : memref<4x8x128xf32, #tpu.memory_space<vmem>>, vector<1x8x128xf32>
    %271 = vector.shape_cast %270 : vector<1x8x128xf32> to vector<8x128xf32>
    %272 = arith.addf %271, %264 : vector<8x128xf32>
    %c2_66 = arith.constant 2 : index
    %c0_67 = arith.constant 0 : index
    %c0_68 = arith.constant 0 : index
    %273 = vector.load %arg8[%c2_66, %c0_67, %c0_68] : memref<4x8x128xf32, #tpu.memory_space<vmem>>, vector<1x8x128xf32>
    %274 = vector.shape_cast %273 : vector<1x8x128xf32> to vector<8x128xf32>
    %275 = vector.shape_cast %272 : vector<8x128xf32> to vector<1x8x128xf32>
    tpu.vector_store %arg8[%c2_66, %c0_67, %c0_68], %275 {strides = array<i32>} : memref<4x8x128xf32, #tpu.memory_space<vmem>>, vector<1x8x128xf32>,
    %c127_i32_69 = arith.constant 127 : i32
    %276 = tpu.dynamic_rotate %272 by %c127_i32_69 dim 1 : vector<8x128xf32>, i32 -> vector<8x128xf32>
    %c127_i32_70 = arith.constant 127 : i32
    %277 = tpu.dynamic_rotate %269 by %c127_i32_70 dim 1 : vector<8x128xf32>, i32 -> vector<8x128xf32>
    %c1_i32_71 = arith.constant 1 : i32
    %278 = tpu.dynamic_rotate %272 by %c1_i32_71 dim 1 : vector<8x128xf32>, i32 -> vector<8x128xf32>
    %c1_i32_72 = arith.constant 1 : i32
    %279 = tpu.dynamic_rotate %269 by %c1_i32_72 dim 1 : vector<8x128xf32>, i32 -> vector<8x128xf32>
    %280 = vector.shape_cast %29 : vector<1x128xi1> to vector<1x128xi1>
    %281 = vector.broadcast %280 : vector<1x128xi1> to vector<8x128xi1>
    %282 = arith.select %281, %276, %278 : vector<8x128xi1>, vector<8x128xf32>
    %283 = vector.shape_cast %29 : vector<1x128xi1> to vector<1x128xi1>
    %284 = vector.broadcast %283 : vector<1x128xi1> to vector<8x128xi1>
    %285 = arith.select %284, %277, %279 : vector<8x128xi1>, vector<8x128xf32>
    %286 = vector.broadcast %20 : vector<1x128xf32> to vector<8x128xf32>
    %287 = arith.mulf %272, %286 : vector<8x128xf32>
    %288 = vector.broadcast %21 : vector<1x128xf32> to vector<8x128xf32>
    %289 = arith.mulf %269, %288 : vector<8x128xf32>
    %290 = arith.subf %287, %289 : vector<8x128xf32>
    %291 = vector.broadcast %24 : vector<1x128xf32> to vector<8x128xf32>
    %292 = arith.mulf %282, %291 : vector<8x128xf32>
    %293 = arith.addf %290, %292 : vector<8x128xf32>
    %294 = vector.broadcast %25 : vector<1x128xf32> to vector<8x128xf32>
    %295 = arith.mulf %285, %294 : vector<8x128xf32>
    %296 = arith.subf %293, %295 : vector<8x128xf32>
    %297 = vector.broadcast %21 : vector<1x128xf32> to vector<8x128xf32>
    %298 = arith.mulf %272, %297 : vector<8x128xf32>
    %299 = vector.broadcast %20 : vector<1x128xf32> to vector<8x128xf32>
    %300 = arith.mulf %269, %299 : vector<8x128xf32>
    %301 = arith.addf %298, %300 : vector<8x128xf32>
    %302 = vector.broadcast %25 : vector<1x128xf32> to vector<8x128xf32>
    %303 = arith.mulf %282, %302 : vector<8x128xf32>
    %304 = arith.addf %301, %303 : vector<8x128xf32>
    %305 = vector.broadcast %24 : vector<1x128xf32> to vector<8x128xf32>
    %306 = arith.mulf %285, %305 : vector<8x128xf32>
    %307 = arith.addf %304, %306 : vector<8x128xf32>
    %c127_i32_73 = arith.constant 127 : i32
    %308 = tpu.dynamic_rotate %296 by %c127_i32_73 dim 1 : vector<8x128xf32>, i32 -> vector<8x128xf32>
    %c127_i32_74 = arith.constant 127 : i32
    %309 = tpu.dynamic_rotate %307 by %c127_i32_74 dim 1 : vector<8x128xf32>, i32 -> vector<8x128xf32>
    %c1_i32_75 = arith.constant 1 : i32
    %310 = tpu.dynamic_rotate %296 by %c1_i32_75 dim 1 : vector<8x128xf32>, i32 -> vector<8x128xf32>
    %c1_i32_76 = arith.constant 1 : i32
    %311 = tpu.dynamic_rotate %307 by %c1_i32_76 dim 1 : vector<8x128xf32>, i32 -> vector<8x128xf32>
    %312 = vector.shape_cast %31 : vector<1x128xi1> to vector<1x128xi1>
    %313 = vector.broadcast %312 : vector<1x128xi1> to vector<8x128xi1>
    %314 = arith.select %313, %308, %310 : vector<8x128xi1>, vector<8x128xf32>
    %315 = vector.shape_cast %31 : vector<1x128xi1> to vector<1x128xi1>
    %316 = vector.broadcast %315 : vector<1x128xi1> to vector<8x128xi1>
    %317 = arith.select %316, %309, %311 : vector<8x128xi1>, vector<8x128xf32>
    %318 = vector.broadcast %22 : vector<1x128xf32> to vector<8x128xf32>
    %319 = arith.mulf %296, %318 : vector<8x128xf32>
    %320 = vector.broadcast %23 : vector<1x128xf32> to vector<8x128xf32>
    %321 = arith.mulf %307, %320 : vector<8x128xf32>
    %322 = arith.subf %319, %321 : vector<8x128xf32>
    %323 = vector.broadcast %26 : vector<1x128xf32> to vector<8x128xf32>
    %324 = arith.mulf %314, %323 : vector<8x128xf32>
    %325 = arith.addf %322, %324 : vector<8x128xf32>
    %326 = vector.broadcast %27 : vector<1x128xf32> to vector<8x128xf32>
    %327 = arith.mulf %317, %326 : vector<8x128xf32>
    %328 = arith.subf %325, %327 : vector<8x128xf32>
    %329 = vector.broadcast %23 : vector<1x128xf32> to vector<8x128xf32>
    %330 = arith.mulf %296, %329 : vector<8x128xf32>
    %331 = vector.broadcast %22 : vector<1x128xf32> to vector<8x128xf32>
    %332 = arith.mulf %307, %331 : vector<8x128xf32>
    %333 = arith.addf %330, %332 : vector<8x128xf32>
    %334 = vector.broadcast %27 : vector<1x128xf32> to vector<8x128xf32>
    %335 = arith.mulf %314, %334 : vector<8x128xf32>
    %336 = arith.addf %333, %335 : vector<8x128xf32>
    %337 = vector.broadcast %26 : vector<1x128xf32> to vector<8x128xf32>
    %338 = arith.mulf %317, %337 : vector<8x128xf32>
    %339 = arith.addf %336, %338 : vector<8x128xf32>
    %340 = vector.broadcast %32 : vector<1x128xf32> to vector<8x128xf32>
    %341 = arith.mulf %328, %340 : vector<8x128xf32>
    %342 = vector.broadcast %33 : vector<1x128xf32> to vector<8x128xf32>
    %343 = arith.mulf %339, %342 : vector<8x128xf32>
    %344 = arith.subf %341, %343 : vector<8x128xf32>
    %345 = vector.broadcast %33 : vector<1x128xf32> to vector<8x128xf32>
    %346 = arith.mulf %328, %345 : vector<8x128xf32>
    %347 = vector.broadcast %32 : vector<1x128xf32> to vector<8x128xf32>
    %348 = arith.mulf %339, %347 : vector<8x128xf32>
    %349 = arith.addf %346, %348 : vector<8x128xf32>
    %c3 = arith.constant 3 : index
    %c0_77 = arith.constant 0 : index
    %c0_78 = arith.constant 0 : index
    %350 = vector.load %arg1[%c3, %c0_77, %c0_78] : memref<4x8x128xf32, #tpu.memory_space<vmem>>, vector<1x8x128xf32>
    %351 = vector.shape_cast %350 : vector<1x8x128xf32> to vector<8x128xf32>
    %352 = arith.addf %351, %344 : vector<8x128xf32>
    %c3_79 = arith.constant 3 : index
    %c0_80 = arith.constant 0 : index
    %c0_81 = arith.constant 0 : index
    %353 = vector.load %arg8[%c3_79, %c0_80, %c0_81] : memref<4x8x128xf32, #tpu.memory_space<vmem>>, vector<1x8x128xf32>
    %354 = vector.shape_cast %353 : vector<1x8x128xf32> to vector<8x128xf32>
    %355 = vector.shape_cast %352 : vector<8x128xf32> to vector<1x8x128xf32>
    tpu.vector_store %arg8[%c3_79, %c0_80, %c0_81], %355 {strides = array<i32>} : memref<4x8x128xf32, #tpu.memory_space<vmem>>, vector<1x8x128xf32>,
    %c0_82 = arith.constant 0 : index
    %c0_83 = arith.constant 0 : index
    %356 = vector.load %arg9[%c0_82, %c0_83] : memref<8x128xf32, #tpu.memory_space<vmem>>, vector<8x128xf32>
    tpu.vector_store %arg9[%c0_82, %c0_83], %352 {strides = array<i32>} : memref<8x128xf32, #tpu.memory_space<vmem>>, vector<8x128xf32>,
    %c0_84 = arith.constant 0 : index
    %c0_85 = arith.constant 0 : index
    %357 = vector.load %arg10[%c0_84, %c0_85] : memref<8x128xf32, #tpu.memory_space<vmem>>, vector<8x128xf32>
    tpu.vector_store %arg10[%c0_84, %c0_85], %349 {strides = array<i32>} : memref<8x128xf32, #tpu.memory_space<vmem>>, vector<8x128xf32>,
    return
  }
  func.func @transform_0(%arg0: i32) -> (i32, i32, i32) {
    %c0_i32 = arith.constant 0 : i32
    %c0_i32_0 = arith.constant 0 : i32
    %c0_i32_1 = arith.constant 0 : i32
    return %arg0, %c0_i32, %c0_i32_0 : i32, i32, i32
  }
  func.func @transform_1(%arg0: i32) -> (i32, i32) {
    %c0_i32 = arith.constant 0 : i32
    %c0_i32_0 = arith.constant 0 : i32
    %c0_i32_1 = arith.constant 0 : i32
    return %c0_i32, %c0_i32_0 : i32, i32
  }
  func.func @transform_2(%arg0: i32) -> (i32, i32) {
    %c0_i32 = arith.constant 0 : i32
    %c0_i32_0 = arith.constant 0 : i32
    %c0_i32_1 = arith.constant 0 : i32
    return %c0_i32, %c0_i32_0 : i32, i32
  }
  func.func @transform_3(%arg0: i32) -> (i32, i32) {
    %c0_i32 = arith.constant 0 : i32
    %c0_i32_0 = arith.constant 0 : i32
    %c0_i32_1 = arith.constant 0 : i32
    return %c0_i32, %c0_i32_0 : i32, i32
  }
  func.func @transform_4(%arg0: i32) -> (i32, i32) {
    %c0_i32 = arith.constant 0 : i32
    %c0_i32_0 = arith.constant 0 : i32
    %c0_i32_1 = arith.constant 0 : i32
    return %c0_i32, %c0_i32_0 : i32, i32
  }
  func.func @transform_5(%arg0: i32) -> (i32, i32) {
    %c0_i32 = arith.constant 0 : i32
    %c0_i32_0 = arith.constant 0 : i32
    %c0_i32_1 = arith.constant 0 : i32
    return %c0_i32, %c0_i32_0 : i32, i32
  }
  func.func @transform_6(%arg0: i32) -> (i32, i32) {
    %c0_i32 = arith.constant 0 : i32
    %c0_i32_0 = arith.constant 0 : i32
    %c0_i32_1 = arith.constant 0 : i32
    return %c0_i32, %c0_i32_0 : i32, i32
  }
  func.func @transform_7(%arg0: i32) -> (i32, i32, i32) {
    %c0_i32 = arith.constant 0 : i32
    %c0_i32_0 = arith.constant 0 : i32
    %c0_i32_1 = arith.constant 0 : i32
    return %arg0, %c0_i32, %c0_i32_0 : i32, i32, i32
  }
  func.func @transform_8(%arg0: i32) -> (i32, i32) {
    %c0_i32 = arith.constant 0 : i32
    %c0_i32_0 = arith.constant 0 : i32
    %c0_i32_1 = arith.constant 0 : i32
    return %c0_i32, %c0_i32_0 : i32, i32
  }
  func.func @transform_9(%arg0: i32) -> (i32, i32) {
    %c0_i32 = arith.constant 0 : i32
    %c0_i32_0 = arith.constant 0 : i32
    %c0_i32_1 = arith.constant 0 : i32
    return %c0_i32, %c0_i32_0 : i32, i32
  }
}

</mosaic_0001>

<bundles_post_ra>
// kernel: tpu_custom_call.1
= control target key start
LH: loop header
LB: loop body
LE: loop exit
PB: predicated region body
PF: predicated region fallthrough
CT: control target
= control target key end

     0   :  { %s1543_s0 = inlined_call_operand.hbm [shape: f32[8,8,128], index: 0, kind: input, shape index: {}]   ;;  %s1544_s1 = inlined_call_operand.vmem [shape: f32[2,128], index: 1, kind: input, shape index: {}]   ;;  %s1545_s2 = inlined_call_operand.vmem [shape: f32[2,128], index: 2, kind: input, shape index: {}]   ;;  %s1546_s3 = inlined_call_operand.vmem [shape: f32[2,128], index: 3, kind: input, shape index: {}]   ;;  %s1547_s4 = inlined_call_operand.vmem [shape: f32[2,128], index: 4, kind: input, shape index: {}]   ;;  %s1548_s5 = inlined_call_operand.vmem [shape: f32[1,128], index: 5, kind: input, shape index: {}]   ;;  %s1549_s6 = inlined_call_operand.vmem [shape: f32[1,128], index: 6, kind: input, shape index: {}]   ;;  %s1550_s7 = inlined_call_operand.hbm [shape: f32[8,8,128], index: 7, kind: output, shape index: {0}]   ;;  %s1551_s8 = inlined_call_operand.hbm [shape: f32[8,128], index: 8, kind: output, shape index: {1}]   ;;  %s1552_s9 = inlined_call_operand.hbm [shape: f32[8,128], index: 9, kind: output, shape index: {2}]  }
   0x1   :  { %1555 = sst [smem:[#allocation12_spill]] %s1543_s0 }
   0x2   :  { %1556 = sst [smem:[#allocation13_spill]] %s1544_s1 }
   0x3   :  { %15 = vsyncpa [#allocation3], 0 }
   0x4   :  { %17 = vsyncpa [#allocation3 + $0x1], 0 }
   0x5   :  { %18 = vsyncpa [#allocation4], 0 }
   0x6   :  { %20 = vsyncpa [#allocation4 + $0x1], 0 }
   0x7   :  { %21 = vsyncpa [#allocation7], 0  ;;  %s1116_s30 = smov 0   ;;  %s1118_s10 = smov 0  }
   0x8   :  { %s1120_s11 = smov 0   ;;  %s1122_s12 = smov 0  }
   0x9 LB: > { %s1137_s13 = sadd.s32 4294967295, %s1053_s12   ;;  %s797_s14 = sadd.s32 4294967294, %s1053_s12   ;;  %s1053_s12 = sphi %s1122_s12, %s1582_s12   ;;  %s1049_s11 = sphi %s1120_s11, %s1581_s11   ;;  %s1045_s10 = sphi %s1118_s10, %s1580_s10   ;;  %s1041_s30 = sphi %s1116_s30, %s1579_s30  }
   0xa   : > { %s1141_s15 = sadd.s32 1, %s1053_s12   ;;  %s34_s16 = sadd.s32 1, %s1049_s11 }
   0xb   : > { %s31_s17 = ssub.s32 %s1053_s12, %s1141_s15  ;;  %p41_p0 = scmp.ne.s32.totalorder %s1049_s11, %s1045_s10 }
   0xc   : > { %p32_p1 = scmp.eq.s32.totalorder %s31_s17, 0  ;;  %p42_p2 = scmp.eq.s32.totalorder %s1053_s12, 0 }
   0xd   : > { %p47_p3 = scmp.ne.s32.totalorder %s1045_s10, %s1041_s30  ;;  %p48_p4 = scmp.eq.s32.totalorder %s1137_s13, 0 }
   0xe   : > { %s1153_s18 = scalar_select %p32_p1, %s1049_s11, %s34_s16  }
   0xf   : > { %p1155_p5 = por %p42_p2, %p41_p0  ;;  %p1159_p6 = por %p48_p4, %p47_p3 }
  0x10   : > { %p1553_p7 = scmp.eq.s32.totalorder %s1137_s13, 1  ;;  %p203_p8 = scmp.eq.s32.totalorder %s797_s14, 1 }
  0x11   : > { %p854_p10 = scmp.lt.s32.totalorder %s1053_s12, 2  ;;  %s283_s23 = sand.u32 1, %s1049_s11  }
  0x12   : > { %p1168_p11 = por %p1553_p7, %p41_p0  ;;  %p1172_p12 = por %p203_p8, %p47_p3 }
  0x13   : > { %s832_s24 = sshll.u32 %s1053_s12, 9  ;;  %s800_s25 = sshll.u32 %s283_s23, 5 }
  0x14   : > { %s1559_s21 = scalar_select %p1168_p11, 1, 0 }
  0x15   : > { %s1560_s22 = scalar_select %p1172_p12, 1, 0 }
  0x16   : > { %s1561_s0 = sld [smem:[#allocation12_spill]]  ;;  %s287_s29 = scalar_lea.vmem [#allocation2], %s800_s25 }
  0x17   : > { %s294_s14 = sshll.u32 %s287_s29, 4  ;;  %p1185_p13 = pnand %p854_p10, %p1155_p5  ;;  %s1189_s14 = int_to_ptr.vmem [resolvable:$true] %s294_s14 }
  0x18   : > { %s1191_s17 = scalar_lea.sflag [#allocation3], %s283_s23 }
  0x19   : > { %p903_p1 = pneg %p1185_p13 }
  0x1c   : > { %s1181_s28 = scalar_lea.hbm %s1561_s0, %s832_s24  ;;  %s906_s25 = scalar_lea.hbm %s1561_s0, 1024 }
  0x1d   : > { %s901_s26 = scalar_lea.hbm %s1181_s28, 512  ;;  %p907_p4 = scmp.lt.u32.totalorder %s1181_s28, %s1561_s0 }
  0x1e   : > { %p902_p0 = scmp.ne.s32.totalorder %s1181_s28, %s901_s26  ;;  %p908_p5 = scmp.lt.u32.totalorder %s906_s25, %s901_s26 }
  0x1f   : > { %p910_p10 = scmp.lt.u32.totalorder %s901_s26, %s1181_s28 }
  0x20   : > { %p904_p2 = pnand %p903_p1, %p902_p0  ;;  %p909_p8 = por %p908_p5, %p907_p4 }
  0x22   : > { %p905_p3 = pneg %p904_p2  ;;  %p911_p9 = por %p910_p10, %p909_p8 }
  0x24   : > { %p912_p7 = pnand %p911_p9, %p905_p3 }
  0x26   : > { %915 = shalt.err (!%p912_p7)
}
  0x27   : > { %s916_s23 = scalar_lea.vmem %s1189_s14, 512  ;;  %s1055_s24 = smov [#allocation2]  }
  0x28   : > { %p917_p0 = scmp.ne.s32.totalorder %s1189_s14, %s916_s23  ;;  %s921_s19 = sshll.u32 %s1055_s24, 4  ;;  %s922_s19 = int_to_ptr.vmem [resolvable:$false] %s921_s19 }
  0x29   : > { %s923_s27 = scalar_lea.vmem %s922_s19, 1024  ;;  %p924_p11 = scmp.lt.s32.totalorder %s1189_s14, %s922_s19 }
  0x2a   : > { %p919_p2 = pnand %p917_p0, %p903_p1  ;;  %p925_p4 = scmp.lt.s32.totalorder %s923_s27, %s916_s23 }
  0x2c   : > { %p920_p12 = pneg %p919_p2  ;;  %p926_p5 = por %p925_p4, %p924_p11 }
  0x2e   : > { %p927_p8 = pnand %p926_p5, %p920_p12 }
  0x30   : > { %930 = shalt.err (!%p927_p8)
}
  0x31   : > { %s1056_s26 = smov 128   ;;  %s1057_s25 = smov 8  }
  0x32   : > { %849 = dma.hbm_to_vmem [thread:$0]  (!%p1185_p13), %s1181_s28, 512, %s1189_s14, %s1191_s17, %s1056_s26, %s1056_s26, %s1057_s25  }
  0x33   : > { %p803_p7 = scmp.ge.s32.totalorder %s1053_s12, 1  ;;  %p302_p9 = scmp.lt.s32.totalorder %s1053_s12, 3 }
  0x35   : > { %p303_p1 = pnand %p803_p7, %p302_p9 }
  0x36   : > { %s1222_s29 = sand.u32 (!%p303_p1), 1, %s1045_s10  }
  0x37   : > { %306 = sbr.rel (%p303_p1) target bundleno = 1156 (0x484), region = 48  ;;  %s804_s23 = sshll.u32 (!%p303_p1), %s1222_s29, 5 }
  0x38   : > { %s309_s24 = scalar_lea.sflag (!%p303_p1), [#allocation3], %s1222_s29  ;;  %s1226_s19 = scalar_lea.vmem (!%p303_p1), [#allocation2], %s804_s23 }
  0x3e   : > { %1028 = dma.done.wait (%p1159_p6), %s309_s24, 512  }
  0x3f   : > { %1030 = vsyncadd (%p1159_p6), %s309_s24, 4294966784  ;;  %s1232_s28 = scalar_lea.vmem [#allocation5], %s804_s23  ;;  %p806_p11 = scmp.ne.s32.totalorder %s1137_s13, 0 }
  0x40   : > { %v1058_v0 = vmov (!%p806_p11), 0.0  }
  0x41   : > { %352 = sbr.rel (%p806_p11) target bundleno = 72 (0x48), region = 56  ;;  %353 = vst [vmem:[#allocation6] sm:$0xff] (!%p806_p11), %v1058_v0  ;;  %354 = vst [vmem:[#allocation8] sm:$0xff] (!%p806_p11), %v1058_v0 }
  0x48 PF: > { %v382_v1 = vld [vmem:[#allocation8] sm:$0xff]  ;;  %v381_v2 = vld [vmem:[#allocation6] sm:$0xff]  ;;  %s1059_s14 = smov 127   ;;  %s1060_s16 = smov 1   ;;  %v355_v3 = vlaneseq }
  0x49   : > { %385 = vrot.lane.b32.xlu1 %v382_v1, %s1059_s14  ;;  %383 = vrot.lane.b32.xlu0 %v381_v2, %s1059_s14  ;;  %s1563_s1 = sld [smem:[#allocation13_spill]]  ;;  %v1247_v6 = vld [vmem:[%s1545_s2] ss:$0 sm:$0xff]  ;;  %v1283_v30 = vld [vmem:[%s1545_s2 + $0x1] ss:$0 sm:$0xff]  ;;  %s833_s24 = sshll.u32 %s1137_s13, 9 }
  0x4a   : > { %v356_v4 = vand.u32 127, %v355_v3  ;;  %v404_v11 = vmul.f32 %v1247_v6, %v382_v1  ;;  %v418_v12 = vmul.f32 %v1247_v6, %v381_v2  ;;  %v1260_v15 = vld [vmem:[%s1546_s3] ss:$0 sm:$0xff]  ;;  %v1300_v40 = vld [vmem:[%s1546_s3 + $0x1] ss:$0 sm:$0xff]  ;;  %s681_s20 = sshll.u32 %s1232_s28, 4  ;;  %s1449_s23 = scalar_lea.hbm %s1550_s7, %s833_s24  ;;  %s1451_s20 = int_to_ptr.vmem [resolvable:$true] %s681_s20 }
  0x4b   : > { %v1265_v16 = vld [vmem:[%s1547_s4] ss:$0 sm:$0xff]  ;;  %v1305_v41 = vld [vmem:[%s1547_s4 + $0x1] ss:$0 sm:$0xff]  ;;  %s1062_s17 = smov [#allocation8]   ;;  %p1568_p12 = scmp.eq.s32.totalorder %s1137_s13, 1 }
  0x4c   : > { %v361_v7 = vand.u32 1, %v356_v4  ;;  %v1318_v54 = vld [vmem:[%s1548_s5] ss:$0 sm:$0xff]  ;;  %s706_s27 = sshll.u32 %s1062_s17, 4  ;;  %s1454_s27 = int_to_ptr.vmem [resolvable:$true] %s706_s27 }
  0x4d   : > { %389 = vrot.lane.b32.xlu1 %v382_v1, %s1060_s16  ;;  %387 = vrot.lane.b32.xlu0 %v381_v2, %s1060_s16  ;;  %v1323_v55 = vld [vmem:[%s1549_s6] ss:$0 sm:$0xff] }
  0x4e   : > { %vm1253_vm0 = vcmp.eq.s32.totalorder %v361_v7, 0  ;;  %vm1293_vm1 = vcmp.eq.s32.totalorder %v361_v7, 1  ;;  %v485_v62 = vld [vmem:[%s1226_s19] sm:$0xff] }
  0x4f   : > { %v1242_v5 = vld [vmem:[%s1563_s1] ss:$0 sm:$0xff]  ;;  %v1278_v29 = vld [vmem:[%s1563_s1 + $0x1] ss:$0 sm:$0xff] }
  0x50   : > { %v399_v10 = vmul.f32 %v1242_v5, %v381_v2  ;;  %v419_v13 = vmul.f32 %v1242_v5, %v382_v1 }
  0x52   : > { %v405_v19 = vsub.f32 %v399_v10, %v404_v11  ;;  %v420_v20 = vadd.f32 %v419_v13, %v418_v12 }
  0xbb   : > { %v386_v8 = vpop.permute.xlu1 %385  ;;  %v384_v9 = vpop.permute.xlu0 %383 }
  0xbf   : > { %v390_v17 = vpop.permute.xlu1 %389  ;;  %v388_v18 = vpop.permute.xlu0 %387 }
  0xc0   : > { %v394_v21 = vsel %vm1253_vm0, %v386_v8, %v390_v17  ;;  %v393_v22 = vsel %vm1253_vm0, %v384_v9, %v388_v18 }
  0xc1   : > { %v410_v23 = vmul.f32 %v1260_v15, %v393_v22  ;;  %v421_v24 = vmul.f32 %v1265_v16, %v393_v22  ;;  %v416_v25 = vmul.f32 %v1265_v16, %v394_v21  ;;  %v423_v26 = vmul.f32 %v1260_v15, %v394_v21 }
  0xc3   : > { %v411_v27 = vadd.f32 %v410_v23, %v405_v19  ;;  %v422_v28 = vadd.f32 %v421_v24, %v420_v20 }
  0xc5   : > { %v417_v31 = vsub.f32 %v411_v27, %v416_v25  ;;  %v424_v32 = vadd.f32 %v423_v26, %v422_v28 }
  0xc7   : > { %429 = vrot.lane.b32.xlu1 %v417_v31, %s1060_s16  ;;  %425 = vrot.lane.b32.xlu0 %v417_v31, %s1059_s14  ;;  %v446_v33 = vmul.f32 %v1283_v30, %v424_v32  ;;  %v461_v34 = vmul.f32 %v1278_v29, %v424_v32  ;;  %v441_v35 = vmul.f32 %v1278_v29, %v417_v31 }
  0xc8   : > { %v460_v36 = vmul.f32 %v1283_v30, %v417_v31 }
  0xc9   : > { %v447_v37 = vsub.f32 %v441_v35, %v446_v33 }
  0xca   : > { %v462_v38 = vadd.f32 %v461_v34, %v460_v36 }
  0xcb   : > { %431 = vrot.lane.b32.xlu1 %v424_v32, %s1060_s16  ;;  %427 = vrot.lane.b32.xlu0 %v424_v32, %s1059_s14 }
 0x139   : > { %v430_v42 = vpop.permute.xlu1 %429  ;;  %v426_v43 = vpop.permute.xlu0 %425 }
 0x13a   : > { %v435_v44 = vsel %vm1293_vm1, %v426_v43, %v430_v42 }
 0x13b   : > { %v452_v45 = vmul.f32 %v1300_v40, %v435_v44  ;;  %v463_v46 = vmul.f32 %v1305_v41, %v435_v44 }
 0x13d   : > { %v432_v47 = vpop.permute.xlu1 %431  ;;  %v428_v48 = vpop.permute.xlu0 %427  ;;  %v453_v50 = vadd.f32 %v452_v45, %v447_v37  ;;  %v464_v51 = vadd.f32 %v463_v46, %v462_v38 }
 0x13e   : > { %v436_v49 = vsel %vm1293_vm1, %v428_v48, %v432_v47 }
 0x13f   : > { %v458_v52 = vmul.f32 %v1305_v41, %v436_v49  ;;  %v465_v53 = vmul.f32 %v1300_v40, %v436_v49 }
 0x141   : > { %v459_v56 = vsub.f32 %v453_v50, %v458_v52  ;;  %v466_v57 = vadd.f32 %v465_v53, %v464_v51 }
 0x143   : > { %v473_v58 = vmul.f32 %v1318_v54, %v459_v56  ;;  %v480_v59 = vmul.f32 %v1323_v55, %v466_v57  ;;  %v482_v60 = vmul.f32 %v1323_v55, %v459_v56  ;;  %v483_v61 = vmul.f32 %v1318_v54, %v466_v57 }
 0x145   : > { %v481_v63 = vsub.f32 %v473_v58, %v480_v59  ;;  %v484_v0 = vadd.f32 %v483_v61, %v482_v60  ;;  %v817_v58 = vld [vmem:[%s1226_s19 + $0x8] sm:$0xff] }
 0x147   : > { %v486_v1 = vadd.f32 %v485_v62, %v481_v63  ;;  %v499_v2 = vmul.f32 %v1247_v6, %v484_v0  ;;  %v506_v3 = vmul.f32 %v1242_v5, %v484_v0 }
 0x149   : > { %487 = vst [vmem:[%s1232_s28] sm:$0xff] %v486_v1  ;;  %492 = vrot.lane.b32.xlu1 %v486_v1, %s1060_s16  ;;  %488 = vrot.lane.b32.xlu0 %v486_v1, %s1059_s14  ;;  %v498_v4 = vmul.f32 %v1242_v5, %v486_v1  ;;  %v505_v7 = vmul.f32 %v1247_v6, %v486_v1 }
 0x14b   : > { %v500_v8 = vsub.f32 %v498_v4, %v499_v2  ;;  %v507_v9 = vadd.f32 %v506_v3, %v505_v7 }
 0x14d   : > { %494 = vrot.lane.b32.xlu1 %v484_v0, %s1060_s16  ;;  %490 = vrot.lane.b32.xlu0 %v484_v0, %s1059_s14 }
 0x1bb   : > { %v493_v10 = vpop.permute.xlu1 %492  ;;  %v489_v11 = vpop.permute.xlu0 %488 }
 0x1bc   : > { %v496_v12 = vsel %vm1253_vm0, %v489_v11, %v493_v10 }
 0x1bd   : > { %v501_v13 = vmul.f32 %v1260_v15, %v496_v12  ;;  %v508_v17 = vmul.f32 %v1265_v16, %v496_v12 }
 0x1bf   : > { %v495_v18 = vpop.permute.xlu1 %494  ;;  %v491_v19 = vpop.permute.xlu0 %490  ;;  %v502_v21 = vadd.f32 %v501_v13, %v500_v8  ;;  %v509_v22 = vadd.f32 %v508_v17, %v507_v9 }
 0x1c0   : > { %v497_v20 = vsel %vm1253_vm0, %v491_v19, %v495_v18 }
 0x1c1   : > { %v503_v23 = vmul.f32 %v1265_v16, %v497_v20  ;;  %v510_v24 = vmul.f32 %v1260_v15, %v497_v20 }
 0x1c3   : > { %v504_v25 = vsub.f32 %v502_v21, %v503_v23  ;;  %v511_v26 = vadd.f32 %v510_v24, %v509_v22 }
 0x1c5   : > { %516 = vrot.lane.b32.xlu1 %v504_v25, %s1060_s16  ;;  %512 = vrot.lane.b32.xlu0 %v504_v25, %s1059_s14  ;;  %v523_v27 = vmul.f32 %v1283_v30, %v511_v26  ;;  %v530_v28 = vmul.f32 %v1278_v29, %v511_v26  ;;  %v522_v31 = vmul.f32 %v1278_v29, %v504_v25 }
 0x1c6   : > { %v529_v32 = vmul.f32 %v1283_v30, %v504_v25 }
 0x1c7   : > { %v524_v33 = vsub.f32 %v522_v31, %v523_v27 }
 0x1c8   : > { %v531_v34 = vadd.f32 %v530_v28, %v529_v32 }
 0x1c9   : > { %518 = vrot.lane.b32.xlu1 %v511_v26, %s1060_s16  ;;  %514 = vrot.lane.b32.xlu0 %v511_v26, %s1059_s14 }
 0x237   : > { %v517_v35 = vpop.permute.xlu1 %516  ;;  %v513_v36 = vpop.permute.xlu0 %512 }
 0x238   : > { %v520_v37 = vsel %vm1293_vm1, %v513_v36, %v517_v35 }
 0x239   : > { %v525_v38 = vmul.f32 %v1300_v40, %v520_v37  ;;  %v532_v42 = vmul.f32 %v1305_v41, %v520_v37 }
 0x23b   : > { %v519_v43 = vpop.permute.xlu1 %518  ;;  %v515_v44 = vpop.permute.xlu0 %514  ;;  %v526_v46 = vadd.f32 %v525_v38, %v524_v33  ;;  %v533_v47 = vadd.f32 %v532_v42, %v531_v34 }
 0x23c   : > { %v521_v45 = vsel %vm1293_vm1, %v515_v44, %v519_v43 }
 0x23d   : > { %v527_v48 = vmul.f32 %v1305_v41, %v521_v45  ;;  %v534_v49 = vmul.f32 %v1300_v40, %v521_v45 }
 0x23f   : > { %v528_v50 = vsub.f32 %v526_v46, %v527_v48  ;;  %v535_v51 = vadd.f32 %v534_v49, %v533_v47 }
 0x241   : > { %v536_v52 = vmul.f32 %v1318_v54, %v528_v50  ;;  %v537_v53 = vmul.f32 %v1323_v55, %v535_v51  ;;  %v539_v56 = vmul.f32 %v1323_v55, %v528_v50  ;;  %v540_v57 = vmul.f32 %v1318_v54, %v535_v51 }
 0x243   : > { %v538_v59 = vsub.f32 %v536_v52, %v537_v53  ;;  %v541_v60 = vadd.f32 %v540_v57, %v539_v56  ;;  %v819_v52 = vld [vmem:[%s1226_s19 + $0x10] sm:$0xff] }
 0x245   : > { %v544_v61 = vadd.f32 %v817_v58, %v538_v59  ;;  %v558_v62 = vmul.f32 %v1247_v6, %v541_v60  ;;  %v565_v63 = vmul.f32 %v1242_v5, %v541_v60 }
 0x247   : > { %818 = vst [vmem:[%s1232_s28 + $0x8] sm:$0xff] %v544_v61  ;;  %551 = vrot.lane.b32.xlu1 %v544_v61, %s1060_s16  ;;  %547 = vrot.lane.b32.xlu0 %v544_v61, %s1059_s14  ;;  %v557_v0 = vmul.f32 %v1242_v5, %v544_v61  ;;  %v564_v1 = vmul.f32 %v1247_v6, %v544_v61 }
 0x249   : > { %v559_v2 = vsub.f32 %v557_v0, %v558_v62  ;;  %v566_v3 = vadd.f32 %v565_v63, %v564_v1 }
 0x24b   : > { %553 = vrot.lane.b32.xlu1 %v541_v60, %s1060_s16  ;;  %549 = vrot.lane.b32.xlu0 %v541_v60, %s1059_s14 }
 0x2b9   : > { %v552_v4 = vpop.permute.xlu1 %551  ;;  %v548_v7 = vpop.permute.xlu0 %547 }
 0x2ba   : > { %v555_v8 = vsel %vm1253_vm0, %v548_v7, %v552_v4 }
 0x2bb   : > { %v560_v9 = vmul.f32 %v1260_v15, %v555_v8  ;;  %v567_v10 = vmul.f32 %v1265_v16, %v555_v8 }
 0x2bd   : > { %v554_v11 = vpop.permute.xlu1 %553  ;;  %v550_v12 = vpop.permute.xlu0 %549  ;;  %v561_v17 = vadd.f32 %v560_v9, %v559_v2  ;;  %v568_v18 = vadd.f32 %v567_v10, %v566_v3 }
 0x2be   : > { %v556_v13 = vsel %vm1253_vm0, %v550_v12, %v554_v11 }
 0x2bf   : > { %v562_v19 = vmul.f32 %v1265_v16, %v556_v13  ;;  %v569_v20 = vmul.f32 %v1260_v15, %v556_v13 }
 0x2c1   : > { %v563_v21 = vsub.f32 %v561_v17, %v562_v19  ;;  %v570_v22 = vadd.f32 %v569_v20, %v568_v18 }
 0x2c3   : > { %575 = vrot.lane.b32.xlu1 %v563_v21, %s1060_s16  ;;  %571 = vrot.lane.b32.xlu0 %v563_v21, %s1059_s14  ;;  %v582_v23 = vmul.f32 %v1283_v30, %v570_v22  ;;  %v589_v24 = vmul.f32 %v1278_v29, %v570_v22  ;;  %v581_v25 = vmul.f32 %v1278_v29, %v563_v21 }
 0x2c4   : > { %v588_v26 = vmul.f32 %v1283_v30, %v563_v21 }
 0x2c5   : > { %v583_v27 = vsub.f32 %v581_v25, %v582_v23 }
 0x2c6   : > { %v590_v28 = vadd.f32 %v589_v24, %v588_v26 }
 0x2c7   : > { %577 = vrot.lane.b32.xlu1 %v570_v22, %s1060_s16  ;;  %573 = vrot.lane.b32.xlu0 %v570_v22, %s1059_s14 }
 0x335   : > { %v576_v31 = vpop.permute.xlu1 %575  ;;  %v572_v32 = vpop.permute.xlu0 %571 }
 0x336   : > { %v579_v33 = vsel %vm1293_vm1, %v572_v32, %v576_v31 }
 0x337   : > { %v584_v34 = vmul.f32 %v1300_v40, %v579_v33  ;;  %v591_v35 = vmul.f32 %v1305_v41, %v579_v33 }
 0x339   : > { %v578_v36 = vpop.permute.xlu1 %577  ;;  %v574_v37 = vpop.permute.xlu0 %573  ;;  %v585_v42 = vadd.f32 %v584_v34, %v583_v27  ;;  %v592_v43 = vadd.f32 %v591_v35, %v590_v28 }
 0x33a   : > { %v580_v38 = vsel %vm1293_vm1, %v574_v37, %v578_v36  ;;  %v821_v37 = vld [vmem:[%s1226_s19 + $0x18] sm:$0xff] }
 0x33b   : > { %v586_v44 = vmul.f32 %v1305_v41, %v580_v38  ;;  %v593_v45 = vmul.f32 %v1300_v40, %v580_v38 }
 0x33d   : > { %v587_v46 = vsub.f32 %v585_v42, %v586_v44  ;;  %v594_v47 = vadd.f32 %v593_v45, %v592_v43 }
 0x33f   : > { %v595_v48 = vmul.f32 %v1318_v54, %v587_v46  ;;  %v596_v49 = vmul.f32 %v1323_v55, %v594_v47  ;;  %v598_v50 = vmul.f32 %v1323_v55, %v587_v46  ;;  %v599_v51 = vmul.f32 %v1318_v54, %v594_v47 }
 0x341   : > { %v597_v53 = vsub.f32 %v595_v48, %v596_v49  ;;  %v600_v56 = vadd.f32 %v599_v51, %v598_v50 }
 0x343   : > { %v603_v57 = vadd.f32 %v819_v52, %v597_v53  ;;  %v617_v58 = vmul.f32 %v1247_v6, %v600_v56  ;;  %v624_v59 = vmul.f32 %v1242_v5, %v600_v56 }
 0x345   : > { %820 = vst [vmem:[%s1232_s28 + $0x10] sm:$0xff] %v603_v57  ;;  %610 = vrot.lane.b32.xlu1 %v603_v57, %s1060_s16  ;;  %606 = vrot.lane.b32.xlu0 %v603_v57, %s1059_s14  ;;  %v616_v60 = vmul.f32 %v1242_v5, %v603_v57  ;;  %v623_v61 = vmul.f32 %v1247_v6, %v603_v57 }
 0x347   : > { %v618_v62 = vsub.f32 %v616_v60, %v617_v58  ;;  %v625_v63 = vadd.f32 %v624_v59, %v623_v61 }
 0x349   : > { %612 = vrot.lane.b32.xlu1 %v600_v56, %s1060_s16  ;;  %608 = vrot.lane.b32.xlu0 %v600_v56, %s1059_s14 }
 0x3b7   : > { %v611_v0 = vpop.permute.xlu1 %610  ;;  %v607_v1 = vpop.permute.xlu0 %606 }
 0x3b8   : > { %v614_v2 = vsel %vm1253_vm0, %v607_v1, %v611_v0 }
 0x3b9   : > { %v619_v3 = vmul.f32 %v1260_v15, %v614_v2  ;;  %v626_v4 = vmul.f32 %v1265_v16, %v614_v2 }
 0x3bb   : > { %v613_v7 = vpop.permute.xlu1 %612  ;;  %v609_v8 = vpop.permute.xlu0 %608  ;;  %v620_v6 = vadd.f32 %v619_v3, %v618_v62  ;;  %v627_v9 = vadd.f32 %v626_v4, %v625_v63 }
 0x3bc   : > { %v615_v5 = vsel %vm1253_vm0, %v609_v8, %v613_v7 }
 0x3bd   : > { %v621_v10 = vmul.f32 %v1265_v16, %v615_v5  ;;  %v628_v11 = vmul.f32 %v1260_v15, %v615_v5 }
 0x3bf   : > { %v622_v12 = vsub.f32 %v620_v6, %v621_v10  ;;  %v629_v13 = vadd.f32 %v628_v11, %v627_v9 }
 0x3c1   : > { %634 = vrot.lane.b32.xlu1 %v622_v12, %s1060_s16  ;;  %630 = vrot.lane.b32.xlu0 %v622_v12, %s1059_s14  ;;  %v641_v17 = vmul.f32 %v1283_v30, %v629_v13  ;;  %v648_v18 = vmul.f32 %v1278_v29, %v629_v13  ;;  %v640_v19 = vmul.f32 %v1278_v29, %v622_v12 }
 0x3c2   : > { %v647_v14 = vmul.f32 %v1283_v30, %v622_v12 }
 0x3c3   : > { %v642_v20 = vsub.f32 %v640_v19, %v641_v17 }
 0x3c4   : > { %v649_v21 = vadd.f32 %v648_v18, %v647_v14 }
 0x3c5   : > { %636 = vrot.lane.b32.xlu1 %v629_v13, %s1060_s16  ;;  %632 = vrot.lane.b32.xlu0 %v629_v13, %s1059_s14  ;;  %s1061_s14 = smov [#allocation6]  }
 0x3c6   : > { %s695_s16 = sshll.u32 %s1061_s14, 4  ;;  %s696_s16 = int_to_ptr.vmem [resolvable:$true] %s695_s16 }
 0x3c7   : > { %s931_s19 = scalar_lea.vmem %s696_s16, 128  ;;  %p938_p10 = scmp.lt.s32.totalorder %s696_s16, %s696_s16 }
 0x3c8   : > { %p932_p6 = scmp.ne.s32.totalorder %s696_s16, %s931_s19  ;;  %p939_p0 = scmp.lt.s32.totalorder %s931_s19, %s931_s19 }
 0x3ca   : > { %p933_p13 = pnand %p932_p6, %p1568_p12  ;;  %p940_p2 = por %p939_p0, %p938_p10 }
 0x3cc   : > { %p934_p3 = pneg %p933_p13 }
 0x3ce   : > { %p941_p4 = pnand %p940_p2, %p934_p3 }
 0x433   : > { %v635_v15 = vpop.permute.xlu1 %634  ;;  %v631_v16 = vpop.permute.xlu0 %630 }
 0x434   : > { %v638_v22 = vsel %vm1293_vm1, %v631_v16, %v635_v15 }
 0x435   : > { %v643_v23 = vmul.f32 %v1300_v40, %v638_v22  ;;  %v650_v24 = vmul.f32 %v1305_v41, %v638_v22 }
 0x437   : > { %v637_v25 = vpop.permute.xlu1 %636  ;;  %v633_v29 = vpop.permute.xlu0 %632  ;;  %v644_v26 = vadd.f32 %v643_v23, %v642_v20  ;;  %v651_v27 = vadd.f32 %v650_v24, %v649_v21 }
 0x438   : > { %v639_v30 = vsel %vm1293_vm1, %v633_v29, %v637_v25 }
 0x439   : > { %v645_v28 = vmul.f32 %v1305_v41, %v639_v30  ;;  %v652_v31 = vmul.f32 %v1300_v40, %v639_v30 }
 0x43b   : > { %v646_v32 = vsub.f32 %v644_v26, %v645_v28  ;;  %v653_v33 = vadd.f32 %v652_v31, %v651_v27 }
 0x43d   : > { %v654_v34 = vmul.f32 %v1318_v54, %v646_v32  ;;  %v655_v35 = vmul.f32 %v1323_v55, %v653_v33  ;;  %v657_v36 = vmul.f32 %v1323_v55, %v646_v32  ;;  %v658_v39 = vmul.f32 %v1318_v54, %v653_v33 }
 0x43f   : > { %v656_v41 = vsub.f32 %v654_v34, %v655_v35  ;;  %v659_v40 = vadd.f32 %v658_v39, %v657_v36 }
 0x441   : > { %v662_v38 = vadd.f32 %v821_v37, %v656_v41  ;;  %666 = vst [vmem:[#allocation8] sm:$0xff] %v659_v40 }
 0x443   : > { %822 = vst [vmem:[%s1232_s28 + $0x18] sm:$0xff] %v662_v38  ;;  %665 = vst [vmem:[#allocation6] sm:$0xff] %v662_v38 }
 0x444   : > { %944 = shalt.err (!%p941_p4)
}
 0x445   : > { %s945_s17 = scalar_lea.hbm %s1551_s8, 128  ;;  %p1569_p8 = pmov %p1568_p12 }
 0x446   : > { %p946_p5 = scmp.ne.s32.totalorder %s1551_s8, %s945_s17  ;;  %p951_p1 = scmp.lt.u32.totalorder %s945_s17, %s1551_s8 }
 0x448   : > { %p947_p7 = pnand %p946_p5, %p1569_p8 }
 0x44a   : > { %p948_p9 = pneg %p947_p7 }
 0x44c   : > { %p953_p11 = pnand %p951_p1, %p948_p9 }
 0x44e   : > { %956 = shalt.err (!%p953_p11)
}
 0x44f   : > { %p1570_p6 = pmov %p1569_p8  ;;  %s668_s14 = scalar_lea.sflag [#allocation4], %s1222_s29 }
 0x450   : > { %s957_s24 = scalar_lea.vmem %s1451_s20, 512  ;;  %p1571_p13 = scmp.ne.s32.totalorder %s1559_s21, 0 }
 0x451   : > { %838 = dma.vmem_to_hbm [thread:$0]  (%p1570_p6), %s696_s16, 128, %s1551_s8, [#allocation7]  }
 0x452   : > { %p958_p12 = scmp.ne.s32.totalorder %s1451_s20, %s957_s24  ;;  %s1063_s0 = smov [#allocation5]  }
 0x453   : > { %s961_s17 = sshll.u32 %s1063_s0, 4  ;;  %s962_s17 = int_to_ptr.vmem [resolvable:$false] %s961_s17 }
 0x454   : > { %p959_p3 = pnand %p958_p12, %p1571_p13  ;;  %s963_s26 = scalar_lea.vmem %s962_s17, 1024 }
 0x455   : > { %p964_p0 = scmp.lt.s32.totalorder %s1451_s20, %s962_s17  ;;  %p965_p2 = scmp.lt.s32.totalorder %s963_s26, %s957_s24 }
 0x456   : > { %p960_p10 = pneg %p959_p3 }
 0x457   : > { %p966_p4 = por %p965_p2, %p964_p0 }
 0x459   : > { %p967_p5 = pnand %p966_p4, %p960_p10 }
 0x45b   : > { %970 = shalt.err (!%p967_p5)
}
 0x45c   : > { %s971_s1 = scalar_lea.hbm %s1449_s23, 512  ;;  %s975_s25 = scalar_lea.hbm %s1550_s7, 1024 }
 0x45d   : > { %p972_p8 = scmp.ne.s32.totalorder %s1449_s23, %s971_s1  ;;  %p976_p1 = scmp.lt.u32.totalorder %s1449_s23, %s1550_s7 }
 0x45e   : > { %p977_p11 = scmp.lt.u32.totalorder %s975_s25, %s971_s1  ;;  %p979_p12 = scmp.lt.u32.totalorder %s971_s1, %s1449_s23 }
 0x45f   : > { %p973_p7 = pnand %p972_p8, %p1571_p13 }
 0x460   : > { %p978_p6 = por %p977_p11, %p976_p1 }
 0x461   : > { %p974_p9 = pneg %p973_p7 }
 0x462   : > { %p980_p3 = por %p979_p12, %p978_p6 }
 0x464   : > { %p981_p10 = pnand %p980_p3, %p974_p9 }
 0x466   : > { %984 = shalt.err (!%p981_p10)
}
 0x467   : > { %s1064_s24 = smov 128   ;;  %s1065_s17 = smov 8  }
 0x468   : > { %836 = dma.vmem_to_hbm [thread:$0]  (%p1571_p13), %s1451_s20, 512, %s1449_s23, %s668_s14, %s1064_s24, %s1064_s24, %s1065_s17  }
 0x469   : > { %s985_s26 = scalar_lea.vmem %s1454_s27, 128  ;;  %p1572_p2 = scmp.eq.s32.totalorder %s1137_s13, 1 }
 0x46a   : > { %p986_p0 = scmp.ne.s32.totalorder %s1454_s27, %s985_s26  ;;  %p992_p8 = scmp.lt.s32.totalorder %s1454_s27, %s1454_s27 }
 0x46b   : > { %p993_p7 = scmp.lt.s32.totalorder %s985_s26, %s985_s26 }
 0x46c   : > { %p987_p4 = pnand %p986_p0, %p1572_p2 }
 0x46d   : > { %p994_p9 = por %p993_p7, %p992_p8 }
 0x46e   : > { %p988_p5 = pneg %p987_p4 }
 0x470   : > { %p995_p1 = pnand %p994_p9, %p988_p5 }
 0x472   : > { %998 = shalt.err (!%p995_p1)
}
 0x473   : > { %s999_s28 = scalar_lea.hbm %s1552_s9, 128  ;;  %p1573_p11 = pmov %p1572_p2 }
 0x474   : > { %p1000_p13 = scmp.ne.s32.totalorder %s1552_s9, %s999_s28  ;;  %p1005_p3 = scmp.lt.u32.totalorder %s999_s28, %s1552_s9 }
 0x476   : > { %p1001_p6 = pnand %p1000_p13, %p1573_p11 }
 0x478   : > { %p1002_p12 = pneg %p1001_p6 }
 0x47a   : > { %p1007_p10 = pnand %p1005_p3, %p1002_p12 }
 0x47c   : > { %1010 = shalt.err (!%p1007_p10)
}
 0x47d   : > { %p1574_p0 = pmov %p1572_p2 }
 0x47f   : > { %840 = dma.vmem_to_hbm [thread:$0]  (%p1574_p0), %s1454_s27, 128, %s1552_s9, [#allocation7]  }
 0x480   : > { %p1575_p2 = pmov %p1574_p0 }
 0x481   : > { %p1576_p4 = pmov %p1574_p0 }
 0x482   : > { %1032 = dma.done.wait (%p1575_p2), [#allocation7], 256  }
 0x483   : > { %1034 = vsyncadd (%p1576_p4), [#allocation7], 4294967040 }
 0x484 PF: > { %s726_s19 = sand.u32 1, %s1041_s30   ;;  %p1577_p5 = scmp.ne.s32.totalorder %s1560_s22, 0 }
 0x485   : > { %p1578_p8 = scmp.ge.s32.totalorder %s1053_s12, 2  ;;  %s727_s0 = scalar_lea.sflag [#allocation4], %s726_s19 }
 0x487   : > { %p851_p7 = pnand %p1578_p8, %p1577_p5 }
 0x489   : > { %1036 = dma.done.wait (!%p851_p7), %s727_s0, 512  }
 0x48a   : > { %1038 = vsyncadd (!%p851_p7), %s727_s0, 4294966784  ;;  %p24_p9 = scmp.ge.s32.totalorder %s1141_s15, 4   ;;  %s1579_s30 = smov %s1045_s10 }
 0x48b   : > { %s1580_s10 = smov %s1049_s11  ;;  %s1581_s11 = smov %s1153_s18 }
 0x48c   : > { %s1582_s12 = smov %s1141_s15  ;;  %26 = sbr.rel (!%p24_p9) target bundleno = 9 (0x9), region = 119 }
 0x493   :  { %732 = vsyncpa [#allocation3], 1 }
 0x494   :  { %734 = vsyncpa [#allocation3 + $0x1], 1 }
 0x495   :  { %735 = vsyncpa [#allocation4], 1 }
 0x496   :  { %737 = vsyncpa [#allocation4 + $0x1], 1 }
 0x497   :  { %738 = vsyncpa [#allocation7], 1 }

</bundles_post_ra>
